<compile_context>
chip_gen: v6e
topology: v6e:2x2x1
jax: 0.10.0
libtpu: 0.0.40
codegen_flags: <defaults>
</compile_context>

<pallas_src>
import functools

import jax
import jax.numpy as jnp
from jax.experimental import pallas as pl
from jax.experimental.pallas import tpu as pltpu

_LANES = 128  # batch elements packed per slab row / output lanes per row
_F = 5        # input feature count of MyNet


def _round_up(n, m):
    return ((n + m - 1) // m) * m


def mynet_kernel(w_ref, b_ref, x_ref, o_ref):
    # w_ref: (640, 128) folded weight, w_ref[5*j+k, j] = W_eff[0, k] (resident)
    # b_ref: (1, 1)   folded bias (resident)
    # x_ref: (rows, 640) tile; lane 5*j+k = feature k of packed batch element j
    # o_ref: (rows, 128) tile; lane j = output of packed batch element j
    o_ref[...] = (
        jnp.dot(x_ref[...], w_ref[...], preferred_element_type=jnp.float32)
        + b_ref[...]
    )


@functools.partial(jax.jit, static_argnames=("tile_rows",))
def mynet_forward(x, w1, b1, w2, b2, *, tile_rows=1024):
    """x: (B, 5) f32; w1: (5, 5); b1: (5,); w2: (1, 5); b2: (1,). Returns (B, 1).

    Matches PyTorch:  out = (x @ w1.T + b1) @ w2.T + b2
    """
    B, F = x.shape
    assert F == _F, f"MyNet expects 5 input features, got {F}"

    # Fold the two linears (no nonlinearity between them) into one affine map.
    w_eff = (w2 @ w1).astype(jnp.float32)                        # (1, 5)
    b_eff = (w2 @ b1 + b2).reshape(1, 1).astype(jnp.float32)     # (1, 1)

    # Expand into the packed-layout weight:  W_big[5*j+k, j] = w_eff[0, k]
    # so that (rows, 640) @ W_big -> (rows, 128) dense batch outputs.
    w_big = jnp.kron(jnp.eye(_LANES, dtype=jnp.float32),
                     w_eff.reshape(F, 1))                        # (640, 128)

    # Pack 128 batch rows per slab row.  Row-major reshape => free when
    # B % 128 == 0; otherwise pad by at most 127 rows (one small XLA pad).
    B_pad = _round_up(B, _LANES)
    if B_pad != B:
        x = jnp.pad(x, ((0, B_pad - B), (0, 0)))
    n_rows = B_pad // _LANES
    x_packed = x.reshape(n_rows, _LANES * F)                     # (n_rows, 640)

    # Tile the packed-row axis.  If it spans the whole array any size is legal;
    # otherwise keep the block second-minor dim a multiple of 8.
    tr = min(tile_rows, n_rows)
    if tr < n_rows:
        tr = max(8, (tr // 8) * 8)
    grid = (pl.cdiv(n_rows, tr),)   # ragged tail handled by Pallas masking

    out = pl.pallas_call(
        mynet_kernel,
        out_shape=jax.ShapeDtypeStruct((n_rows, _LANES), jnp.float32),
        grid=grid,
        in_specs=[
            # Tiny folded weight / bias stay resident across all grid steps.
            pl.BlockSpec((F * _LANES, _LANES), lambda i: (0, 0)),
            pl.BlockSpec((1, 1), lambda i: (0, 0)),
            # Lane-dense x tiles stream through (double-buffered by Pallas).
            pl.BlockSpec((tr, F * _LANES), lambda i: (i, 0)),
        ],
        out_specs=pl.BlockSpec((tr, _LANES), lambda i: (i, 0)),
        compiler_params=pltpu.CompilerParams(
            dimension_semantics=("parallel",),  # shard batch across TCs on v7x
        ),
        cost_estimate=pl.CostEstimate(
            flops=2 * n_rows * (F * _LANES) * _LANES,
            transcendentals=0,
            bytes_accessed=n_rows * (F * _LANES + _LANES) * 4
            + (F * _LANES) * _LANES * 4,
        ),
    )(w_big, b_eff, x_packed)

    # Flat order of (n_rows, 128) is exactly batch order -> free reshape.
    return out.reshape(-1, 1)[:B]


def init_params(key):
    """Deterministic init matching nn.Linear shapes (uniform like PyTorch default)."""
    k1, k2, k3, k4 = jax.random.split(key, 4)
    in1, out1 = 5, 5
    in2, out2 = 5, 1
    bound1 = 1.0 / jnp.sqrt(in1)
    bound2 = 1.0 / jnp.sqrt(in2)
    w1 = jax.random.uniform(k1, (out1, in1), jnp.float32, -bound1, bound1)
    b1 = jax.random.uniform(k2, (out1,), jnp.float32, -bound1, bound1)
    w2 = jax.random.uniform(k3, (out2, in2), jnp.float32, -bound2, bound2)
    b2 = jax.random.uniform(k4, (out2,), jnp.float32, -bound2, bound2)
    return w1, b1, w2, b2


def _reference(x, w1, b1, w2, b2):
    return (x @ w1.T + b1) @ w2.T + b2


if __name__ == "__main__":
    key = jax.random.PRNGKey(0)
    k_x, k_p = jax.random.split(key)
    w1, b1, w2, b2 = init_params(k_p)

    # Primary small check (B = 8, single packed row).
    B = 8
    x = jax.random.normal(k_x, (B, 5), dtype=jnp.float32)
    out = jax.block_until_ready(mynet_forward(x, w1, b1, w2, b2))
    ref = _reference(x, w1, b1, w2, b2)
    assert out.shape == (B, 1), out.shape
    assert jnp.allclose(out, ref, atol=1e-5, rtol=1e-5), "mismatch vs reference (B=8)"

    # Secondary check: non-multiple-of-128 batch + multi-step grid w/ ragged tail.
    B2 = 2500
    x2 = jax.random.normal(jax.random.PRNGKey(1), (B2, 5), dtype=jnp.float32)
    out2 = jax.block_until_ready(mynet_forward(x2, w1, b1, w2, b2, tile_rows=8))
    ref2 = _reference(x2, w1, b1, w2, b2)
    assert out2.shape == (B2, 1), out2.shape
    assert jnp.allclose(out2, ref2, atol=1e-5, rtol=1e-5), "mismatch vs reference (B=2500)"

    print("KERNEL_OK")
</pallas_src>

<mosaic_0001>
module attributes {stable_mosaic.version = 11 : i64} {
  func.func @mynet_kernel(%arg0: i32, %arg1: memref<640x128xf32, #tpu.memory_space<vmem>>, %arg2: memref<1x1xf32, #tpu.memory_space<vmem>>, %arg3: memref<1x640xf32, #tpu.memory_space<vmem>>, %arg4: memref<1x128xf32, #tpu.memory_space<vmem>>) attributes {dimension_semantics = [#tpu.dimension_semantics<parallel>], iteration_bounds = array<i64: 1>, scalar_prefetch = 0 : i64, scratch_operands = 0 : i64, tpu.core_type = #tpu.core_type<tc>, window_params = [{pipeline_mode = #tpu.pipeline_mode<synchronous>, transform_indices = @transform_0, window_bounds = array<i64: 640, 128>}, {pipeline_mode = #tpu.pipeline_mode<synchronous>, transform_indices = @transform_1, window_bounds = array<i64: 1, 1>}, {transform_indices = @transform_2, window_bounds = array<i64: 1, 640>}, {transform_indices = @transform_3, window_bounds = array<i64: 1, 128>}]} {
    %c0 = arith.constant 0 : index
    %c0_0 = arith.constant 0 : index
    %0 = vector.load %arg3[%c0, %c0_0] : memref<1x640xf32, #tpu.memory_space<vmem>>, vector<1x640xf32>
    %c0_1 = arith.constant 0 : index
    %c0_2 = arith.constant 0 : index
    %1 = vector.load %arg1[%c0_1, %c0_2] : memref<640x128xf32, #tpu.memory_space<vmem>>, vector<640x128xf32>
    %cst = arith.constant dense<0.000000e+00> : vector<1x128xf32>
    %2 = tpu.matmul %0, %1, %cst {dimension_numbers = #tpu.dot_dimension_numbers<[1], [0], [0], [1], [0, 0, 1, 1], [], []>} : vector<1x640xf32>, vector<640x128xf32>, vector<1x128xf32> -> vector<1x128xf32>
    %c0_3 = arith.constant 0 : index
    %c0_4 = arith.constant 0 : index
    %3 = vector.load %arg2[%c0_3, %c0_4] : memref<1x1xf32, #tpu.memory_space<vmem>>, vector<1x1xf32>
    %4 = vector.broadcast %3 : vector<1x1xf32> to vector<1x128xf32>
    %5 = arith.addf %2, %4 : vector<1x128xf32>
    %c0_5 = arith.constant 0 : index
    %c0_6 = arith.constant 0 : index
    %6 = vector.load %arg4[%c0_5, %c0_6] : memref<1x128xf32, #tpu.memory_space<vmem>>, vector<1x128xf32>
    tpu.vector_store %arg4[%c0_5, %c0_6], %5 {strides = array<i32>} : memref<1x128xf32, #tpu.memory_space<vmem>>, vector<1x128xf32>,
    return
  }
  func.func @transform_0(%arg0: i32) -> (i32, i32) {
    %c0_i32 = arith.constant 0 : i32
    %c0_i32_0 = arith.constant 0 : i32
    %c0_i32_1 = arith.constant 0 : i32
    return %c0_i32, %c0_i32_0 : i32, i32
  }
  func.func @transform_1(%arg0: i32) -> (i32, i32) {
    %c0_i32 = arith.constant 0 : i32
    %c0_i32_0 = arith.constant 0 : i32
    %c0_i32_1 = arith.constant 0 : i32
    return %c0_i32, %c0_i32_0 : i32, i32
  }
  func.func @transform_2(%arg0: i32) -> (i32, i32) {
    %c0_i32 = arith.constant 0 : i32
    %c0_i32_0 = arith.constant 0 : i32
    return %arg0, %c0_i32 : i32, i32
  }
  func.func @transform_3(%arg0: i32) -> (i32, i32) {
    %c0_i32 = arith.constant 0 : i32
    %c0_i32_0 = arith.constant 0 : i32
    return %arg0, %c0_i32 : i32, i32
  }
}

</mosaic_0001>

<bundles_post_ra>
// kernel: mynet_forward.1
= control target key start
LH: loop header
LB: loop body
LE: loop exit
PB: predicated region body
PF: predicated region fallthrough
CT: control target
= control target key end

     0   :  { %v474_v3 = vmov 0   ;;  %v103_v37 = vlaneseq  ;;  %vm476_vm0 = vmmov 0   ;;  %s764_s0 = inlined_call_operand.vmem [shape: f32[640,128], index: 0, kind: input, shape index: {}]   ;;  %s765_s1 = inlined_call_operand.<no memory space> [shape: f32[1,1], index: 1, kind: input, shape index: {}]   ;;  %s766_s2 = inlined_call_operand.vmem [shape: f32[1,640], index: 2, kind: input, shape index: {}]   ;;  %s767_s3 = inlined_call_operand.vmem [shape: f32[1,128], index: 3, kind: output, shape index: {}]  }
   0x1   :  { %v48_v0 = vld [vmem:[%s764_s0 + $0xf8] sm:$0xff]  ;;  %v47_v2 = vld [vmem:[%s764_s0 + $0xf0] sm:$0xff]  ;;  %473 = vset.pattern.permute.xlu0 %v474_v3  ;;  %v8_v4 = vstv %s765_s1  ;;  %v46_v8 = vld [vmem:[%s764_s0 + $0xe8] sm:$0xff] }
   0x2   :  { %v32_v1 = vld [vmem:[%s764_s0 + $0x78] sm:$0xff]  ;;  %348 = vmatprep.subr.mxu0 %v48_v0  ;;  %v31_v6 = vld [vmem:[%s764_s0 + $0x70] sm:$0xff]  ;;  %9 = vst [vmem:[#allocation2] sm:$0x1] %v8_v4  ;;  %v30_v10 = vld [vmem:[%s764_s0 + $0x68] sm:$0xff]  ;;  %v629_v46 = vshrl.u32 %v103_v37, 7 }
   0x3   :  { %v80_v5 = vld [vmem:[%s764_s0 + $0x1f8] sm:$0xff]  ;;  %349 = vmatpush3.msra.mxu0 %v32_v1  ;;  %v79_v9 = vld [vmem:[%s764_s0 + $0x1f0] sm:$0xff]  ;;  %v78_v12 = vld [vmem:[%s764_s0 + $0x1e8] sm:$0xff] }
   0x4   :  { %v64_v7 = vld [vmem:[%s764_s0 + $0x178] sm:$0xff]  ;;  %383 = vmatprep.subr.mxu1 %v80_v5  ;;  %350 = vmatprep.subr.mxu0 %v47_v2  ;;  %v63_v11 = vld [vmem:[%s764_s0 + $0x170] sm:$0xff]  ;;  %v45_v13 = vld [vmem:[%s764_s0 + $0xe0] sm:$0xff]  ;;  %v114_v55 = vsub.s32 1, %v629_v46  ;;  %v105_v61 = vsub.s32 0, %v629_v46  ;;  %v122_v3 = vsub.s32 3, %v629_v46 }
   0x5   :  { %384 = vmatpush3.msra.mxu1 %v64_v7  ;;  %351 = vmatpush3.msra.mxu0 %v31_v6  ;;  %v62_v14 = vld [vmem:[%s764_s0 + $0x168] sm:$0xff]  ;;  %v29_v15 = vld [vmem:[%s764_s0 + $0x60] sm:$0xff]  ;;  %v44_v17 = vld [vmem:[%s764_s0 + $0xd8] sm:$0xff]  ;;  %v118_v5 = vsub.s32 2, %v629_v46 }
   0x6   :  { %385 = vmatprep.subr.mxu1 %v79_v9  ;;  %352 = vmatprep.subr.mxu0 %v46_v8  ;;  %v77_v16 = vld [vmem:[%s764_s0 + $0x1e0] sm:$0xff]  ;;  %v28_v19 = vld [vmem:[%s764_s0 + $0x58] sm:$0xff]  ;;  %v43_v21 = vld [vmem:[%s764_s0 + $0xd0] sm:$0xff] }
   0x7   :  { %386 = vmatpush3.msra.mxu1 %v63_v11  ;;  %353 = vmatpush3.msra.mxu0 %v30_v10  ;;  %v61_v18 = vld [vmem:[%s764_s0 + $0x160] sm:$0xff]  ;;  %v76_v20 = vld [vmem:[%s764_s0 + $0x1d8] sm:$0xff]  ;;  %v27_v23 = vld [vmem:[%s764_s0 + $0x50] sm:$0xff] }
   0x8   :  { %387 = vmatprep.subr.mxu1 %v78_v12  ;;  %354 = vmatprep.subr.mxu0 %v45_v13  ;;  %v60_v22 = vld [vmem:[%s764_s0 + $0x158] sm:$0xff]  ;;  %v75_v24 = vld [vmem:[%s764_s0 + $0x1d0] sm:$0xff]  ;;  %v42_v25 = vld [vmem:[%s764_s0 + $0xc8] sm:$0xff] }
   0x9   :  { %388 = vmatpush3.msra.mxu1 %v62_v14  ;;  %355 = vmatpush3.msra.mxu0 %v29_v15  ;;  %v59_v26 = vld [vmem:[%s764_s0 + $0x150] sm:$0xff]  ;;  %v26_v27 = vld [vmem:[%s764_s0 + $0x48] sm:$0xff]  ;;  %v41_v29 = vld [vmem:[%s764_s0 + $0xc0] sm:$0xff]  ;;  %v475_v14 = vmov 0.0  }
   0xa   :  { %389 = vmatprep.subr.mxu1 %v77_v16  ;;  %356 = vmatprep.subr.mxu0 %v44_v17  ;;  %v74_v28 = vld [vmem:[%s764_s0 + $0x1c8] sm:$0xff]  ;;  %v25_v31 = vld [vmem:[%s764_s0 + $0x40] sm:$0xff]  ;;  %v40_v33 = vld [vmem:[%s764_s0 + $0xb8] sm:$0xff] }
   0xb   :  { %390 = vmatpush3.msra.mxu1 %v61_v18  ;;  %357 = vmatpush3.msra.mxu0 %v28_v19  ;;  %v58_v30 = vld [vmem:[%s764_s0 + $0x148] sm:$0xff]  ;;  %v73_v32 = vld [vmem:[%s764_s0 + $0x1c0] sm:$0xff]  ;;  %v24_v35 = vld [vmem:[%s764_s0 + $0x38] sm:$0xff] }
   0xc   :  { %391 = vmatprep.subr.mxu1 %v76_v20  ;;  %358 = vmatprep.subr.mxu0 %v43_v21  ;;  %v57_v34 = vld [vmem:[%s764_s0 + $0x140] sm:$0xff]  ;;  %v72_v36 = vld [vmem:[%s764_s0 + $0x1b8] sm:$0xff]  ;;  %v39_v38 = vld [vmem:[%s764_s0 + $0xb0] sm:$0xff] }
   0xd   :  { %392 = vmatpush3.msra.mxu1 %v60_v22  ;;  %359 = vmatpush3.msra.mxu0 %v27_v23  ;;  %v56_v39 = vld [vmem:[%s764_s0 + $0x138] sm:$0xff]  ;;  %v23_v40 = vld [vmem:[%s764_s0 + $0x30] sm:$0xff]  ;;  %v38_v42 = vld [vmem:[%s764_s0 + $0xa8] sm:$0xff] }
   0xe   :  { %393 = vmatprep.subr.mxu1 %v75_v24  ;;  %360 = vmatprep.subr.mxu0 %v42_v25  ;;  %v71_v41 = vld [vmem:[%s764_s0 + $0x1b0] sm:$0xff]  ;;  %v22_v44 = vld [vmem:[%s764_s0 + $0x28] sm:$0xff]  ;;  %v37_v47 = vld [vmem:[%s764_s0 + $0xa0] sm:$0xff] }
   0xf   :  { %394 = vmatpush3.msra.mxu1 %v59_v26  ;;  %361 = vmatpush3.msra.mxu0 %v26_v27  ;;  %v55_v43 = vld [vmem:[%s764_s0 + $0x130] sm:$0xff]  ;;  %v70_v45 = vld [vmem:[%s764_s0 + $0x1a8] sm:$0xff]  ;;  %v21_v49 = vld [vmem:[%s764_s0 + $0x20] sm:$0xff] }
  0x10   :  { %395 = vmatprep.subr.mxu1 %v74_v28  ;;  %362 = vmatprep.subr.mxu0 %v41_v29  ;;  %v54_v48 = vld [vmem:[%s764_s0 + $0x128] sm:$0xff]  ;;  %v69_v50 = vld [vmem:[%s764_s0 + $0x1a0] sm:$0xff]  ;;  %v36_v51 = vld [vmem:[%s764_s0 + $0x98] sm:$0xff]  ;;  %v126_v29 = vsub.s32 4, %v629_v46 }
  0x11   :  { %396 = vmatpush3.msra.mxu1 %v58_v30  ;;  %363 = vmatpush3.msra.mxu0 %v25_v31  ;;  %v53_v52 = vld [vmem:[%s764_s0 + $0x120] sm:$0xff]  ;;  %v20_v53 = vld [vmem:[%s764_s0 + $0x18] sm:$0xff]  ;;  %v35_v56 = vld [vmem:[%s764_s0 + $0x90] sm:$0xff] }
  0x12   :  { %397 = vmatprep.subr.mxu1 %v73_v32  ;;  %364 = vmatprep.subr.mxu0 %v40_v33  ;;  %v68_v54 = vld [vmem:[%s764_s0 + $0x198] sm:$0xff]  ;;  %v665_v58 = vld [vmem:[%s766_s2] sm:$0x1f]  ;;  %v19_v59 = vld [vmem:[%s764_s0 + $0x10] sm:$0xff] }
  0x13   :  { %398 = vmatpush3.msra.mxu1 %v57_v34  ;;  %365 = vmatpush3.msra.mxu0 %v24_v35  ;;  %v52_v57 = vld [vmem:[%s764_s0 + $0x118] sm:$0xff]  ;;  %v67_v60 = vld [vmem:[%s764_s0 + $0x190] sm:$0xff]  ;;  %v34_v62 = vld [vmem:[%s764_s0 + $0x88] sm:$0xff]  ;;  %v115_v2 = vrot.slane %v665_v58, %v114_v55  ;;  %v111_v8 = vrot.slane %v665_v58, %v105_v61  ;;  %v123_v11 = vrot.slane %v665_v58, %v122_v3 }
  0x14   :  { %399 = vmatprep.subr.mxu1 %v72_v36  ;;  %366 = vmatprep.subr.mxu0 %v39_v38  ;;  %v51_v63 = vld [vmem:[%s764_s0 + $0x110] sm:$0xff]  ;;  %v18_v0 = vld [vmem:[%s764_s0 + $0x8] sm:$0xff]  ;;  %v33_v4 = vld [vmem:[%s764_s0 + $0x80] sm:$0xff]  ;;  %v119_v13 = vrot.slane %v665_v58, %v118_v5  ;;  %v127_v32 = vrot.slane %v665_v58, %v126_v29 }
  0x15   :  { %400 = vmatpush3.msra.mxu1 %v56_v39  ;;  %367 = vmatpush3.msra.mxu0 %v23_v40  ;;  %v66_v1 = vld [vmem:[%s764_s0 + $0x188] sm:$0xff]  ;;  %v17_v6 = vld [vmem:[%s764_s0] sm:$0xff]  ;;  %v96_v12 = vld [vmem:[%s764_s0 + $0x278] sm:$0xff] }
  0x16   :  { %401 = vmatprep.subr.mxu1 %v71_v41  ;;  %368 = vmatprep.subr.mxu0 %v38_v42  ;;  %v50_v7 = vld [vmem:[%s764_s0 + $0x108] sm:$0xff]  ;;  %v65_v9 = vld [vmem:[%s764_s0 + $0x180] sm:$0xff]  ;;  %v95_v15 = vld [vmem:[%s764_s0 + $0x270] sm:$0xff] }
  0x17   :  { %402 = vmatpush3.msra.mxu1 %v55_v43  ;;  %369 = vmatpush3.msra.mxu0 %v22_v44  ;;  %v49_v10 = vld [vmem:[%s764_s0 + $0x100] sm:$0xff]  ;;  %v94_v17 = vld [vmem:[%s764_s0 + $0x268] sm:$0xff]  ;;  %v92_v19 = vld [vmem:[%s764_s0 + $0x258] sm:$0xff] }
  0x18   :  { %403 = vmatprep.subr.mxu1 %v70_v45  ;;  %370 = vmatprep.subr.mxu0 %v37_v47  ;;  %v97_v16 = vld [vmem:[#allocation2] sm:$0x1]  ;;  %v91_v20 = vld [vmem:[%s764_s0 + $0x250] sm:$0xff]  ;;  %v90_v21 = vld [vmem:[%s764_s0 + $0x248] sm:$0xff] }
  0x19   :  { %404 = vmatpush3.msra.mxu1 %v54_v48  ;;  %371 = vmatpush3.msra.mxu0 %v21_v49  ;;  %v93_v18 = vld [vmem:[%s764_s0 + $0x260] sm:$0xff]  ;;  %v88_v23 = vld [vmem:[%s764_s0 + $0x238] sm:$0xff]  ;;  %v87_v24 = vld [vmem:[%s764_s0 + $0x230] sm:$0xff] }
  0x1a   :  { %405 = vmatprep.subr.mxu1 %v69_v50  ;;  %372 = vmatprep.subr.mxu0 %v36_v51  ;;  %v89_v22 = vld [vmem:[%s764_s0 + $0x240] sm:$0xff]  ;;  %v86_v25 = vld [vmem:[%s764_s0 + $0x228] sm:$0xff]  ;;  %v84_v27 = vld [vmem:[%s764_s0 + $0x218] sm:$0xff] }
  0x1b   :  { %406 = vmatpush3.msra.mxu1 %v53_v52  ;;  %373 = vmatpush3.msra.mxu0 %v20_v53  ;;  %v85_v26 = vld [vmem:[%s764_s0 + $0x220] sm:$0xff]  ;;  %v83_v28 = vld [vmem:[%s764_s0 + $0x210] sm:$0xff]  ;;  %v82_v30 = vld [vmem:[%s764_s0 + $0x208] sm:$0xff] }
  0x1c   :  { %407 = vmatprep.subr.mxu1 %v68_v54  ;;  %374 = vmatprep.subr.mxu0 %v35_v56  ;;  %v81_v31 = vld [vmem:[%s764_s0 + $0x200] sm:$0xff] }
  0x1d   :  { %408 = vmatpush3.msra.mxu1 %v52_v57  ;;  %375 = vmatpush3.msra.mxu0 %v19_v59 }
  0x1e   :  { %409 = vmatprep.subr.mxu1 %v67_v60  ;;  %376 = vmatprep.subr.mxu0 %v34_v62 }
  0x1f   :  { %410 = vmatpush3.msra.mxu1 %v51_v63  ;;  %377 = vmatpush3.msra.mxu0 %v18_v0 }
  0x20   :  { %411 = vmatprep.subr.mxu1 %v66_v1  ;;  %378 = vmatprep.subr.mxu0 %v33_v4 }
  0x21   :  { %197 = vmatprep.mubr.f32.mxu0 %v115_v2  ;;  %379 = vmatpush3.msra.mxu0 %v17_v6 }
  0x22   :  { %412 = vmatpush3.msra.mxu1 %v50_v7  ;;  %198 = vmatmul.mubr.f32.vlgmr.msra.gmra.mxu0 %v111_v8 }
  0x23   :  { %413 = vmatprep.subr.mxu1 %v65_v9  ;;  %435 = vmatprep.subr.mxu0 %v475_v14 }
  0x24   :  { %414 = vmatpush3.msra.mxu1 %v49_v10  ;;  %267 = vmatprep.mubr.f32.mxu1 %v123_v11 }
  0x25   :  { %436 = vmatpush3.msra.mxu0 %v96_v12  ;;  %268 = vmatmul.mubr.f32.vlgmr.msra.gmra.mxu1 %v119_v13 }
  0x26   :  { %437 = vmatprep.subr.mxu0 %v475_v14  ;;  %467 = vmatprep.mubr.msk.f32.mxu0 %vm476_vm0, %v475_v14 }
  0x27   :  { %438 = vmatpush3.msra.mxu0 %v95_v15  ;;  %100 = vperm.xlu0 %473, %v97_v16  }
  0x28   :  { %439 = vmatprep.subr.mxu0 %v475_v14 }
  0x29   :  { %440 = vmatpush3.msra.mxu0 %v94_v17 }
  0x2a   :  { %441 = vmatprep.subr.mxu0 %v475_v14 }
  0x2b   :  { %442 = vmatpush3.msra.mxu0 %v93_v18 }
  0x2c   :  { %443 = vmatprep.subr.mxu0 %v475_v14 }
  0x2d   :  { %444 = vmatpush3.msra.mxu0 %v92_v19 }
  0x2e   :  { %445 = vmatprep.subr.mxu0 %v475_v14 }
  0x2f   :  { %446 = vmatpush3.msra.mxu0 %v91_v20 }
  0x30   :  { %447 = vmatprep.subr.mxu0 %v475_v14 }
  0x31   :  { %448 = vmatpush3.msra.mxu0 %v90_v21 }
  0x32   :  { %449 = vmatprep.subr.mxu0 %v475_v14 }
  0x33   :  { %450 = vmatpush3.msra.mxu0 %v89_v22 }
  0x34   :  { %451 = vmatprep.subr.mxu0 %v475_v14 }
  0x35   :  { %452 = vmatpush3.msra.mxu0 %v88_v23 }
  0x36   :  { %453 = vmatprep.subr.mxu0 %v475_v14 }
  0x37   :  { %454 = vmatpush3.msra.mxu0 %v87_v24 }
  0x38   :  { %455 = vmatprep.subr.mxu0 %v475_v14 }
  0x39   :  { %456 = vmatpush3.msra.mxu0 %v86_v25 }
  0x3a   :  { %457 = vmatprep.subr.mxu0 %v475_v14 }
  0x3b   :  { %458 = vmatpush3.msra.mxu0 %v85_v26 }
  0x3c   :  { %459 = vmatprep.subr.mxu0 %v475_v14 }
  0x3d   :  { %460 = vmatpush3.msra.mxu0 %v84_v27 }
  0x3e   :  { %461 = vmatprep.subr.mxu0 %v475_v14 }
  0x3f   :  { %462 = vmatpush3.msra.mxu0 %v83_v28 }
  0x40   :  { %463 = vmatprep.subr.mxu0 %v475_v14 }
  0x41   :  { %464 = vmatpush3.msra.mxu0 %v82_v30 }
  0x42   :  { %465 = vmatprep.subr.mxu0 %v475_v14 }
  0x43   :  { %466 = vmatpush3.msra.mxu0 %v81_v31 }
  0x44   :  { %468 = vmatmul.mubr.f32.vlgmr.msra.gmra.mxu0 %v127_v32 }
  0xa2   :  { %v101_v34 = vpop.permute.xlu0 %100 }
  0xa3   :  { %v106_v37 = vrot.slane %v101_v34, %v105_v61 }
  0xe2   :  { %v380_v33 = vpop.f32.mrf.mxu0 }
  0xe4   :  { %v381_v35 = vpop.f32.mrf.mxu0 }
  0xe5   :  { %v415_v36 = vpop.f32.mrf.mxu1  ;;  %v382_v38 = vadd.f32 %v381_v35, %v380_v33 }
  0xe7   :  { %v416_v39 = vpop.f32.mrf.mxu1  ;;  %v200_v40 = vadd.f32 %v382_v38, %v106_v37 }
  0xe8   :  { %v417_v41 = vadd.f32 %v416_v39, %v415_v36 }
  0xea   :  { %v270_v42 = vadd.f32 %v417_v41, %v200_v40 }
 0x104   :  { %v339_v43 = vpop.f32.mrf.mxu0 }
 0x105   :  { %v340_v44 = vadd.f32 %v339_v43, %v270_v42 }
 0x106   :  { %v469_v45 = vpop.f32.mrf.mxu0 }
 0x107   :  { %343 = vst [vmem:[%s767_s3] sm:$0x1] %v340_v44 }

</bundles_post_ra>
